<compile_context>
chip_gen: v5e
topology: v5e:2x2
jax: 0.10.0
libtpu: 0.0.40
codegen_flags: <defaults>
</compile_context>

<pallas_src>
import functools

import jax
import jax.numpy as jnp
from jax import lax
from jax.experimental import pallas as pl
from jax.experimental.pallas import tpu as pltpu

LANES = 128
TILE_BYTES = 1 << 20   # ~1 MiB per input tile => 4 MiB live with double-buffering
NUM_SHARDS = 2         # megacore split on v7x; harmless sequential split elsewhere


def _bpr_kernel(pos_ref, neg_ref, out_ref, *, tile_r, rows_total,
                steps_per_shard, need_mask):
    # pos_ref / neg_ref: (tile_r, 128) VMEM blocks in the inputs' native dtype.
    # out_ref:           (8, 128) f32 output block, resident across the inner
    #                    (arbitrary) grid axis -> per-shard accumulator.
    s = pl.program_id(1)

    @pl.when(s == 0)
    def _init():
        out_ref[...] = jnp.zeros_like(out_ref)

    d = pos_ref[...].astype(jnp.float32) - neg_ref[...].astype(jnp.float32)
    # Match PyTorch semantics exactly: log(1 + exp(-distance)).
    # (Intentionally the same numerically-unstable form as the reference.)
    loss = jnp.log(1.0 + jnp.exp(-d))

    if need_mask:
        # Ragged last tile (and/or duplicated clamped tile for an odd shard
        # split): mask rows past the true row count.  `blk` is the *intended*
        # (unclamped) block index, so a duplicate block gets valid_rows <= 0
        # and contributes exactly 0.
        c = pl.program_id(0)
        blk = c * steps_per_shard + s
        valid_rows = rows_total - blk * tile_r
        row_idx = lax.broadcasted_iota(jnp.int32, (tile_r, LANES), 0)
        loss = jnp.where(row_idx < valid_rows, loss, 0.0)

    # Pure VALU vreg-wise accumulation into the resident (8, 128) block; the
    # cross-sublane / cross-lane reduction happens once in the wrapper.
    out_ref[...] += loss.reshape(tile_r // 8, 8, LANES).sum(axis=0)


def _bpr_main_sum(pos2d: jax.Array, neg2d: jax.Array) -> jax.Array:
    """Sum of log(1 + exp(-(pos - neg))) over a (rows, 128) slab."""
    rows = pos2d.shape[0]
    itemsize = jnp.dtype(pos2d.dtype).itemsize

    # ~1 MiB per input tile; cap is a multiple of the packed-sublane count.
    cap = TILE_BYTES // (LANES * itemsize)
    tile_r = min(cap, rows)

    num_blocks = pl.cdiv(rows, tile_r)
    shards = NUM_SHARDS if num_blocks >= NUM_SHARDS else 1
    steps = pl.cdiv(num_blocks, shards)
    need_clamp = shards * steps > num_blocks          # odd split -> duplicate block
    need_mask = shards * steps * tile_r != rows       # ragged and/or duplicate
    last_blk = num_blocks - 1

    def in_index(c, s):
        b = c * steps + s
        if need_clamp:
            b = jnp.minimum(b, last_blk)              # never issue a fully-OOB block
        return (b, 0)

    kernel = functools.partial(
        _bpr_kernel,
        tile_r=tile_r,
        rows_total=rows,
        steps_per_shard=steps,
        need_mask=need_mask,
    )

    n_elems = rows * LANES
    cost = pl.CostEstimate(
        flops=4 * n_elems,
        transcendentals=2 * n_elems,
        bytes_accessed=2 * n_elems * itemsize + shards * 8 * LANES * 4,
    )

    partial_sums = pl.pallas_call(
        kernel,
        out_shape=jax.ShapeDtypeStruct((shards * 8, LANES), jnp.float32),
        grid=(shards, steps),
        in_specs=[
            pl.BlockSpec((tile_r, LANES), in_index),
            pl.BlockSpec((tile_r, LANES), in_index),
        ],
        out_specs=pl.BlockSpec((8, LANES), lambda c, s: (c, 0)),
        compiler_params=pltpu.CompilerParams(
            dimension_semantics=("parallel", "arbitrary"),
        ),
        cost_estimate=cost,
    )(pos2d, neg2d)

    return jnp.sum(partial_sums)


def convncf_bpr_loss(pos_score: jax.Array, neg_score: jax.Array) -> jax.Array:
    """Pallas TPU implementation of ConvNCFBPRLoss.forward.

    pos_score, neg_score: shape (N,), same shape & dtype (f32 or bf16).
    Returns a scalar (0-d) f32 array.
    """
    assert pos_score.shape == neg_score.shape and pos_score.ndim == 1
    n = pos_score.shape[0]

    itemsize = jnp.dtype(pos_score.dtype).itemsize
    sublanes = 8 * max(1, 4 // itemsize)     # 8 for f32, 16 for bf16, 32 for 1-byte
    group = sublanes * LANES                 # one fully-packed vreg group of elements

    n_main = (n // group) * group
    tail = n - n_main

    if n_main == 0:
        # Tiny input: pad a single group (< group dummy elements).
        # pos pad = 1e4, neg pad = 0 => distance = 1e4, exp(-1e4) == 0 in f32,
        # so each padded element contributes log(1 + 0) == 0 exactly.
        pad = group - n
        pos_m = jnp.pad(pos_score, (0, pad), constant_values=1e4)
        neg_m = jnp.pad(neg_score, (0, pad), constant_values=0)
        n_main = group
        tail = 0
    elif tail:
        # Group-aligned prefix for the kernel; no full-array pad copy.
        pos_m = pos_score[:n_main]
        neg_m = neg_score[:n_main]
    else:
        pos_m, neg_m = pos_score, neg_score

    rows = n_main // LANES
    total = _bpr_main_sum(pos_m.reshape(rows, LANES), neg_m.reshape(rows, LANES))

    if tail:
        # < one group of leftovers: fold in with a tiny jnp expression.
        d = (pos_score[n_main:].astype(jnp.float32)
             - neg_score[n_main:].astype(jnp.float32))
        total = total + jnp.sum(jnp.log(1.0 + jnp.exp(-d)))

    return total


def _ref_loss(pos, neg):
    d = pos.astype(jnp.float32) - neg.astype(jnp.float32)
    return jnp.sum(jnp.log(1.0 + jnp.exp(-d)))


if __name__ == "__main__":
    key = jax.random.PRNGKey(0)

    # --- case 1: tiny N (padded single-group path) ---------------------------
    kp, kn, key = jax.random.split(key, 3)
    N1 = 8
    pos1 = jax.random.normal(kp, (N1,), dtype=jnp.float32)
    neg1 = jax.random.normal(kn, (N1,), dtype=jnp.float32)
    loss1 = convncf_bpr_loss(pos1, neg1)
    jax.block_until_ready(loss1)
    assert jnp.allclose(loss1, _ref_loss(pos1, neg1), rtol=1e-5, atol=1e-5), (
        loss1, _ref_loss(pos1, neg1))

    # --- case 2: unaligned N, prefix kernel + jnp tail, single block ---------
    kp, kn, key = jax.random.split(key, 3)
    N2 = 70_000
    pos2 = jax.random.normal(kp, (N2,), dtype=jnp.float32)
    neg2 = jax.random.normal(kn, (N2,), dtype=jnp.float32)
    loss2 = convncf_bpr_loss(pos2, neg2)
    jax.block_until_ready(loss2)
    assert jnp.allclose(loss2, _ref_loss(pos2, neg2), rtol=1e-4, atol=1e-2), (
        loss2, _ref_loss(pos2, neg2))

    # --- case 3: bf16 inputs (16-row groups, native-dtype DMA, f32 compute) --
    kp, kn, key = jax.random.split(key, 3)
    N3 = 3000
    pos3 = jax.random.normal(kp, (N3,), dtype=jnp.float32).astype(jnp.bfloat16)
    neg3 = jax.random.normal(kn, (N3,), dtype=jnp.float32).astype(jnp.bfloat16)
    loss3 = convncf_bpr_loss(pos3, neg3)
    jax.block_until_ready(loss3)
    assert jnp.allclose(loss3, _ref_loss(pos3, neg3), rtol=1e-3, atol=1e-2), (
        loss3, _ref_loss(pos3, neg3))

    # --- case 4: multi-block, 2-shard grid with ragged + clamped last tile ---
    kp, kn, key = jax.random.split(key, 3)
    N4 = 600_000  # rows=4680 > 2*2048 -> grid (2,2), masked ragged/duplicate tile
    pos4 = jax.random.normal(kp, (N4,), dtype=jnp.float32)
    neg4 = jax.random.normal(kn, (N4,), dtype=jnp.float32)
    loss4 = convncf_bpr_loss(pos4, neg4)
    jax.block_until_ready(loss4)
    assert jnp.allclose(loss4, _ref_loss(pos4, neg4), rtol=1e-4, atol=1e-1), (
        loss4, _ref_loss(pos4, neg4))

    print("KERNEL_OK")
</pallas_src>

<mosaic_0001>
module attributes {stable_mosaic.version = 11 : i64} {
  func.func @_bpr_kernel(%arg0: i32, %arg1: i32, %arg2: memref<8x128xf32, #tpu.memory_space<vmem>>, %arg3: memref<8x128xf32, #tpu.memory_space<vmem>>, %arg4: memref<8x128xf32, #tpu.memory_space<vmem>>) attributes {dimension_semantics = [#tpu.dimension_semantics<parallel>, #tpu.dimension_semantics<arbitrary>], iteration_bounds = array<i64: 1, 1>, scalar_prefetch = 0 : i64, scratch_operands = 0 : i64, tpu.core_type = #tpu.core_type<tc>, window_params = [{transform_indices = @transform_0, window_bounds = array<i64: 8, 128>}, {transform_indices = @transform_1, window_bounds = array<i64: 8, 128>}, {transform_indices = @transform_2, window_bounds = array<i64: 8, 128>}]} {
    %c0_i32 = arith.constant 0 : i32
    %0 = arith.cmpi eq, %arg1, %c0_i32 : i32
    %1 = arith.extui %0 : i1 to i32
    %c0_i32_0 = arith.constant 0 : i32
    %2 = arith.cmpi ne, %1, %c0_i32_0 : i32
    scf.if %2 {
      %cst_10 = arith.constant 0.000000e+00 : f32
      %17 = vector.broadcast %cst_10 : f32 to vector<8x128xf32>
      %c0_11 = arith.constant 0 : index
      %c0_12 = arith.constant 0 : index
      %18 = vector.load %arg4[%c0_11, %c0_12] : memref<8x128xf32, #tpu.memory_space<vmem>>, vector<8x128xf32>
      tpu.vector_store %arg4[%c0_11, %c0_12], %17 {strides = array<i32>} : memref<8x128xf32, #tpu.memory_space<vmem>>, vector<8x128xf32>,
    } else {
    }
    %c0 = arith.constant 0 : index
    %c0_1 = arith.constant 0 : index
    %3 = vector.load %arg2[%c0, %c0_1] : memref<8x128xf32, #tpu.memory_space<vmem>>, vector<8x128xf32>
    %c0_2 = arith.constant 0 : index
    %c0_3 = arith.constant 0 : index
    %4 = vector.load %arg3[%c0_2, %c0_3] : memref<8x128xf32, #tpu.memory_space<vmem>>, vector<8x128xf32>
    %5 = arith.subf %3, %4 : vector<8x128xf32>
    %cst = arith.constant 0.000000e+00 : f32
    %6 = vector.broadcast %cst : f32 to vector<8x128xf32>
    %7 = arith.subf %6, %5 : vector<8x128xf32>
    %8 = math.exp %7 : vector<8x128xf32>
    %cst_4 = arith.constant 1.000000e+00 : f32
    %9 = vector.broadcast %cst_4 : f32 to vector<8x128xf32>
    %10 = arith.addf %9, %8 : vector<8x128xf32>
    %11 = math.log %10 : vector<8x128xf32>
    %c0_5 = arith.constant 0 : index
    %c0_6 = arith.constant 0 : index
    %12 = vector.load %arg4[%c0_5, %c0_6] : memref<8x128xf32, #tpu.memory_space<vmem>>, vector<8x128xf32>
    %13 = vector.shape_cast %11 : vector<8x128xf32> to vector<1x8x128xf32>
    %cst_7 = arith.constant dense<0.000000e+00> : vector<8x128xf32>
    %14 = vector.multi_reduction <add>, %13, %cst_7 [0] : vector<1x8x128xf32> to vector<8x128xf32>
    %15 = arith.addf %12, %14 : vector<8x128xf32>
    %c0_8 = arith.constant 0 : index
    %c0_9 = arith.constant 0 : index
    %16 = vector.load %arg4[%c0_8, %c0_9] : memref<8x128xf32, #tpu.memory_space<vmem>>, vector<8x128xf32>
    tpu.vector_store %arg4[%c0_8, %c0_9], %15 {strides = array<i32>} : memref<8x128xf32, #tpu.memory_space<vmem>>, vector<8x128xf32>,
    return
  }
  func.func @transform_0(%arg0: i32, %arg1: i32) -> (i32, i32) {
    %c1_i32 = arith.constant 1 : i32
    %0 = arith.muli %arg0, %c1_i32 : i32
    %1 = arith.addi %0, %arg1 : i32
    %c0_i32 = arith.constant 0 : i32
    %c0_i32_0 = arith.constant 0 : i32
    return %1, %c0_i32 : i32, i32
  }
  func.func @transform_1(%arg0: i32, %arg1: i32) -> (i32, i32) {
    %c1_i32 = arith.constant 1 : i32
    %0 = arith.muli %arg0, %c1_i32 : i32
    %1 = arith.addi %0, %arg1 : i32
    %c0_i32 = arith.constant 0 : i32
    %c0_i32_0 = arith.constant 0 : i32
    return %1, %c0_i32 : i32, i32
  }
  func.func @transform_2(%arg0: i32, %arg1: i32) -> (i32, i32) {
    %c0_i32 = arith.constant 0 : i32
    %c0_i32_0 = arith.constant 0 : i32
    return %arg0, %c0_i32 : i32, i32
  }
}

</mosaic_0001>

<bundles_post_ra>
// kernel: tpu_custom_call.1
= control target key start
LH: loop header
LB: loop body
LE: loop exit
PB: predicated region body
PF: predicated region fallthrough
CT: control target
= control target key end

     0   :  { %7 = vsyncpa [#allocation3], 0  ;;  %s197_s0 = inlined_call_operand.hbm [shape: f32[8,128], index: 0, kind: input, shape index: {}]   ;;  %s198_s1 = inlined_call_operand.hbm [shape: f32[8,128], index: 1, kind: input, shape index: {}]   ;;  %s199_s2 = inlined_call_operand.hbm [shape: f32[8,128], index: 2, kind: output, shape index: {}]  }
   0x1   :  { %8 = vsyncpa [#allocation6], 0 }
   0x2   :  { %9 = vsyncpa [#allocation4], 0  ;;  %s18_s11 = sshll.u32 %s197_s0, 4  ;;  %s170_s12 = smov [#allocation2]   ;;  %s19_s11 = int_to_ptr.hbm [resolvable:$true] %s18_s11 }
   0x3   :  { %s20_s13 = sshll.u32 %s170_s12, 4  ;;  %s32_s16 = sshll.u32 %s198_s1, 4  ;;  %s21_s13 = int_to_ptr.vmem [resolvable:$true] %s20_s13  ;;  %s33_s16 = int_to_ptr.hbm [resolvable:$true] %s32_s16 }
   0x4   :  { %23 = dma.hbm_to_vmem [thread:$0]  %s19_s11, 128, %s21_s13, [#allocation3]  }
   0x5   :  { %s171_s17 = smov [#allocation5]  }
   0x6   :  { %s34_s18 = sshll.u32 %s171_s17, 4  ;;  %s35_s18 = int_to_ptr.vmem [resolvable:$true] %s34_s18 }
   0x7   :  { %37 = dma.hbm_to_vmem [thread:$0]  %s33_s16, 128, %s35_s18, [#allocation6]  }
   0x8   :  { %164 = dma.done.wait [#allocation3], 128  }
   0x9   :  { %165 = vsyncadd [#allocation3], 4294967168 }
   0xa   :  { %166 = dma.done.wait [#allocation6], 128  }
   0xb   :  { %167 = vsyncadd [#allocation6], 4294967168  ;;  %v53_v0 = vld [vmem:[#allocation2] sm:$0xff]  ;;  %v54_v1 = vld [vmem:[#allocation5] sm:$0xff]  ;;  %s172_s0 = smov [#allocation7]   ;;  %s73_s21 = sshll.u32 %s199_s2, 4  ;;  %s74_s21 = int_to_ptr.hbm [resolvable:$true] %s73_s21 }
   0xc   :  { %v55_v2 = vsub.f32 %v53_v0, %v54_v1  ;;  %s71_s1 = sshll.u32 %s172_s0, 4  ;;  %s72_s1 = int_to_ptr.vmem [resolvable:$true] %s71_s1 }
   0xe   :  { %v56_v3 = vsub.f32 0.0, %v55_v2 }
  0x10   :  { %v57_v4 = vmul.f32 1.442695, %v56_v3 }
  0x12   :  { %88 = vpow2.f32 %v57_v4 }
  0x18   :  { %v89_v5 = vpop.eup %88 }
  0x19   :  { %v59_v6 = vadd.f32 1.0, %v89_v5 }
  0x1b   :  { %90 = vlog2.f32 %v59_v6 }
  0x21   :  { %v91_v7 = vpop.eup %90 }
  0x22   :  { %v61_v8 = vmul.f32 0.6931472, %v91_v7 }
  0x24   :  { %65 = vst [vmem:[#allocation7] sm:$0xff] %v61_v8 }
  0x25   :  { %76 = dma.vmem_to_hbm [thread:$0]  %s72_s1, 128, %s74_s21, [#allocation4]  }
  0x26   :  { %168 = dma.done.wait [#allocation4], 128  }
  0x27   :  { %169 = vsyncadd [#allocation4], 4294967168 }
  0x28   :  { %81 = vsyncpa [#allocation3], 1 }
  0x29   :  { %82 = vsyncpa [#allocation6], 1 }
  0x2a   :  { %83 = vsyncpa [#allocation4], 1 }

</bundles_post_ra>
